<compile_context>
chip_gen: v6e
topology: v6e:2x2x1
jax: 0.10.0
libtpu: 0.0.40
codegen_flags: <defaults>
</compile_context>

<pallas_src>
import numpy as np
import jax
import jax.numpy as jnp
from jax.experimental import pallas as pl
from jax.experimental.pallas import tpu as pltpu

KSIZE = 5   # Conv2d kernel_size from GaussianLayer.__init__
SIG = 1.0   # Gaussian sigma used by gaussian_kernel
LANE = 128  # TPU lane width

# 1D normalized Gaussian taps as Python float constants.  The normalized 2D
# kernel is the outer product of these:  outer(g, g) / sum == outer(g/sum, g/sum).
_ax = np.arange(-(KSIZE - 1) / 2.0, (KSIZE - 1) / 2.0 + 1.0)
_g1 = np.exp(-0.5 * (_ax ** 2) / (SIG ** 2))
_g1 = _g1 / _g1.sum()
TAPS = tuple(float(t) for t in _g1)


def gaussian_kernel(l=5, sig=1.0, out_chan=1):
    """Normalized 2D Gaussian replicated per channel, shape (out_chan, 1, l, l).

    Matches nn.Conv2d(in, out, k, groups=out).weight for the reference check.
    """
    ax = np.arange(-(l - 1) / 2.0, (l - 1) / 2.0 + 1.0)
    gauss = np.exp(-0.5 * (ax ** 2) / (sig ** 2))
    k2d = np.outer(gauss, gauss)
    k2d = k2d / k2d.sum()
    w = np.tile(k2d[None, None, :, :], (out_chan, 1, 1, 1)).astype(np.float32)
    return jnp.asarray(w)


def _sep_gauss_kernel(x_ref, o_ref):
    """Separable 5x5 'valid' Gaussian conv on a (H, W, lane-block) plane stack.

    x_ref: (H, W, LB)  -- W on sublanes, fused N*C block on lanes
    o_ref: (Ho, Wo, LB)
    """
    ho, wo, _ = o_ref.shape

    # Horizontal pass along W: sublane-offset loads directly from VMEM.
    # t has shape (H, Wo, LB), stays in registers.
    t = x_ref[:, 0:wo, :].astype(jnp.float32) * TAPS[0]
    for dj in range(1, KSIZE):
        t = t + x_ref[:, dj:dj + wo, :].astype(jnp.float32) * TAPS[dj]

    # Vertical pass along H: leading-dim slices of an in-register value are
    # plain vreg-row selections (no XLU work, no lane/sublane moves).
    acc = t[0:ho, :, :] * TAPS[0]
    for di in range(1, KSIZE):
        acc = acc + t[di:di + ho, :, :] * TAPS[di]

    o_ref[...] = acc.astype(o_ref.dtype)


def _choose_lane_block(H, W, Ho, Wo, L, dtype_bytes=4, budget=8 << 20):
    """Largest multiple of 128 lanes whose double-buffered in+out tiles fit
    `budget` bytes of VMEM and that evenly divides the padded lane count L."""
    per_lane = (H * W + Ho * Wo) * dtype_bytes * 2  # in + out, double-buffered
    max_lanes = max(LANE, (budget // per_lane) // LANE * LANE)
    lb = min(max_lanes, L)
    while L % lb != 0:   # L is a multiple of LANE, so this terminates at LANE
        lb -= LANE
    return lb


def gaussian_layer(x):
    """x: (N, C, H, W) float32 -> (N, C, H-K+1, W-K+1) float32 (depthwise Gaussian)."""
    N, C, H, W = x.shape
    Ho, Wo = H - KSIZE + 1, W - KSIZE + 1
    NC = N * C
    L = ((NC + LANE - 1) // LANE) * LANE  # lane-pad fused batch*channel axis
    LB = _choose_lane_block(H, W, Ho, Wo, L, dtype_bytes=x.dtype.itemsize)

    # (N, C, H, W) -> (NC, H, W) -> (H, W, NC) -> pad lanes to a multiple of 128.
    xt = jnp.transpose(x.reshape(NC, H, W), (1, 2, 0))
    if L != NC:
        xt = jnp.pad(xt, ((0, 0), (0, 0), (0, L - NC)))

    out = pl.pallas_call(
        _sep_gauss_kernel,
        out_shape=jax.ShapeDtypeStruct((Ho, Wo, L), x.dtype),
        grid=(L // LB,),
        in_specs=[pl.BlockSpec((H, W, LB), lambda i: (0, 0, i))],
        out_specs=pl.BlockSpec((Ho, Wo, LB), lambda i: (0, 0, i)),
        compiler_params=pltpu.CompilerParams(
            dimension_semantics=("parallel",)),
    )(xt)

    # (Ho, Wo, L) -> drop lane padding -> back to NCHW.
    out = jnp.transpose(out[:, :, :NC], (2, 0, 1)).reshape(N, C, Ho, Wo)
    return out


if __name__ == "__main__":
    # Small shapes consistent with the module: NCHW input, depthwise conv.
    N, C, H, W = 2, 4, 16, 16
    key = jax.random.PRNGKey(0)
    x = jax.random.normal(key, (N, C, H, W), dtype=jnp.float32)

    out = gaussian_layer(x)
    out = jax.block_until_ready(out)

    # Reference check against lax depthwise conv (NCHW, OIHW, valid padding).
    w = gaussian_kernel(l=KSIZE, sig=SIG, out_chan=C)
    ref = jax.lax.conv_general_dilated(
        x, w, window_strides=(1, 1), padding="VALID",
        dimension_numbers=("NCHW", "OIHW", "NCHW"),
        feature_group_count=C)

    assert out.shape == (N, C, H - KSIZE + 1, W - KSIZE + 1)
    assert np.allclose(np.asarray(out), np.asarray(ref), atol=1e-5, rtol=1e-5), \
        "mismatch vs lax conv"

    print("KERNEL_OK")
</pallas_src>

<mosaic_0001>
module attributes {stable_mosaic.version = 11 : i64} {
  func.func @_sep_gauss_kernel(%arg0: i32, %arg1: memref<16x16x128xf32, #tpu.memory_space<vmem>>, %arg2: memref<12x12x128xf32, #tpu.memory_space<vmem>>) attributes {dimension_semantics = [#tpu.dimension_semantics<parallel>], iteration_bounds = array<i64: 1>, scalar_prefetch = 0 : i64, scratch_operands = 0 : i64, tpu.core_type = #tpu.core_type<tc>, window_params = [{transform_indices = @transform_0, window_bounds = array<i64: 16, 16, 128>}, {transform_indices = @transform_1, window_bounds = array<i64: 12, 12, 128>}]} {
    %c0 = arith.constant 0 : index
    %c0_0 = arith.constant 0 : index
    %c0_1 = arith.constant 0 : index
    %0 = vector.load %arg1[%c0, %c0_0, %c0_1] : memref<16x16x128xf32, #tpu.memory_space<vmem>>, vector<16x12x128xf32>
    %cst = arith.constant 0.054488685 : f32
    %1 = vector.broadcast %cst : f32 to vector<16x12x128xf32>
    %2 = arith.mulf %0, %1 : vector<16x12x128xf32>
    %c0_2 = arith.constant 0 : index
    %c1 = arith.constant 1 : index
    %c0_3 = arith.constant 0 : index
    %3 = vector.load %arg1[%c0_2, %c1, %c0_3] : memref<16x16x128xf32, #tpu.memory_space<vmem>>, vector<16x12x128xf32>
    %cst_4 = arith.constant 0.244201347 : f32
    %4 = vector.broadcast %cst_4 : f32 to vector<16x12x128xf32>
    %5 = arith.mulf %3, %4 : vector<16x12x128xf32>
    %6 = arith.addf %2, %5 : vector<16x12x128xf32>
    %c0_5 = arith.constant 0 : index
    %c2 = arith.constant 2 : index
    %c0_6 = arith.constant 0 : index
    %7 = vector.load %arg1[%c0_5, %c2, %c0_6] : memref<16x16x128xf32, #tpu.memory_space<vmem>>, vector<16x12x128xf32>
    %cst_7 = arith.constant 0.402619958 : f32
    %8 = vector.broadcast %cst_7 : f32 to vector<16x12x128xf32>
    %9 = arith.mulf %7, %8 : vector<16x12x128xf32>
    %10 = arith.addf %6, %9 : vector<16x12x128xf32>
    %c0_8 = arith.constant 0 : index
    %c3 = arith.constant 3 : index
    %c0_9 = arith.constant 0 : index
    %11 = vector.load %arg1[%c0_8, %c3, %c0_9] : memref<16x16x128xf32, #tpu.memory_space<vmem>>, vector<16x12x128xf32>
    %cst_10 = arith.constant 0.244201347 : f32
    %12 = vector.broadcast %cst_10 : f32 to vector<16x12x128xf32>
    %13 = arith.mulf %11, %12 : vector<16x12x128xf32>
    %14 = arith.addf %10, %13 : vector<16x12x128xf32>
    %c0_11 = arith.constant 0 : index
    %c4 = arith.constant 4 : index
    %c0_12 = arith.constant 0 : index
    %15 = vector.load %arg1[%c0_11, %c4, %c0_12] : memref<16x16x128xf32, #tpu.memory_space<vmem>>, vector<16x12x128xf32>
    %cst_13 = arith.constant 0.054488685 : f32
    %16 = vector.broadcast %cst_13 : f32 to vector<16x12x128xf32>
    %17 = arith.mulf %15, %16 : vector<16x12x128xf32>
    %18 = arith.addf %14, %17 : vector<16x12x128xf32>
    %19 = vector.extract_strided_slice %18 {offsets = [0, 0, 0], sizes = [12, 12, 128], strides = [1, 1, 1]} : vector<16x12x128xf32> to vector<12x12x128xf32>
    %cst_14 = arith.constant 0.054488685 : f32
    %20 = vector.broadcast %cst_14 : f32 to vector<12x12x128xf32>
    %21 = arith.mulf %19, %20 : vector<12x12x128xf32>
    %22 = vector.extract_strided_slice %18 {offsets = [1, 0, 0], sizes = [12, 12, 128], strides = [1, 1, 1]} : vector<16x12x128xf32> to vector<12x12x128xf32>
    %cst_15 = arith.constant 0.244201347 : f32
    %23 = vector.broadcast %cst_15 : f32 to vector<12x12x128xf32>
    %24 = arith.mulf %22, %23 : vector<12x12x128xf32>
    %25 = arith.addf %21, %24 : vector<12x12x128xf32>
    %26 = vector.extract_strided_slice %18 {offsets = [2, 0, 0], sizes = [12, 12, 128], strides = [1, 1, 1]} : vector<16x12x128xf32> to vector<12x12x128xf32>
    %cst_16 = arith.constant 0.402619958 : f32
    %27 = vector.broadcast %cst_16 : f32 to vector<12x12x128xf32>
    %28 = arith.mulf %26, %27 : vector<12x12x128xf32>
    %29 = arith.addf %25, %28 : vector<12x12x128xf32>
    %30 = vector.extract_strided_slice %18 {offsets = [3, 0, 0], sizes = [12, 12, 128], strides = [1, 1, 1]} : vector<16x12x128xf32> to vector<12x12x128xf32>
    %cst_17 = arith.constant 0.244201347 : f32
    %31 = vector.broadcast %cst_17 : f32 to vector<12x12x128xf32>
    %32 = arith.mulf %30, %31 : vector<12x12x128xf32>
    %33 = arith.addf %29, %32 : vector<12x12x128xf32>
    %34 = vector.extract_strided_slice %18 {offsets = [4, 0, 0], sizes = [12, 12, 128], strides = [1, 1, 1]} : vector<16x12x128xf32> to vector<12x12x128xf32>
    %cst_18 = arith.constant 0.054488685 : f32
    %35 = vector.broadcast %cst_18 : f32 to vector<12x12x128xf32>
    %36 = arith.mulf %34, %35 : vector<12x12x128xf32>
    %37 = arith.addf %33, %36 : vector<12x12x128xf32>
    %c0_19 = arith.constant 0 : index
    %c0_20 = arith.constant 0 : index
    %c0_21 = arith.constant 0 : index
    %38 = vector.load %arg2[%c0_19, %c0_20, %c0_21] : memref<12x12x128xf32, #tpu.memory_space<vmem>>, vector<12x12x128xf32>
    tpu.vector_store %arg2[%c0_19, %c0_20, %c0_21], %37 {strides = array<i32>} : memref<12x12x128xf32, #tpu.memory_space<vmem>>, vector<12x12x128xf32>,
    return
  }
  func.func @transform_0(%arg0: i32) -> (i32, i32, i32) {
    %c0_i32 = arith.constant 0 : i32
    %c0_i32_0 = arith.constant 0 : i32
    %c0_i32_1 = arith.constant 0 : i32
    return %c0_i32, %c0_i32_0, %arg0 : i32, i32, i32
  }
  func.func @transform_1(%arg0: i32) -> (i32, i32, i32) {
    %c0_i32 = arith.constant 0 : i32
    %c0_i32_0 = arith.constant 0 : i32
    %c0_i32_1 = arith.constant 0 : i32
    return %c0_i32, %c0_i32_0, %arg0 : i32, i32, i32
  }
}

</mosaic_0001>

<bundles_post_ra>
// kernel: tpu_custom_call.1
= control target key start
LH: loop header
LB: loop body
LE: loop exit
PB: predicated region body
PF: predicated region fallthrough
CT: control target
= control target key end

     0   :  { %6 = vsyncpa [#allocation3], 0  ;;  %s1032_s0 = inlined_call_operand.hbm [shape: f32[16,16,128], index: 0, kind: input, shape index: {}]   ;;  %s1033_s1 = inlined_call_operand.hbm [shape: f32[12,12,128], index: 1, kind: output, shape index: {}]  }
   0x1   :  { %7 = vsyncpa [#allocation4], 0  ;;  %s740_s6 = smov [#allocation2]  }
   0x2   :  { %s13_s7 = sshll.u32 %s740_s6, 4  ;;  %s14_s7 = int_to_ptr.vmem [resolvable:$true] %s13_s7 }
   0x3   :  { %s704_s8 = scalar_lea.vmem %s14_s7, 4096  ;;  %p709_p1 = scmp.lt.s32.totalorder %s14_s7, %s14_s7 }
   0x4   :  { %p705_p0 = scmp.ne.s32.totalorder %s14_s7, %s704_s8  ;;  %p710_p2 = scmp.lt.s32.totalorder %s704_s8, %s704_s8 }
   0x6   :  { %p711_p3 = por %p710_p2, %p709_p1 }
   0x8   :  { %p712_p4 = pnand %p711_p3, %p705_p0 }
   0xa   :  { %715 = shalt.err (!%p712_p4)
}
   0xb   :  { %s741_s9 = smov 128   ;;  %s742_s10 = smov 8  }
   0xc   :  { %19 = dma.hbm_to_vmem [thread:$0]  %s1032_s0, 4096, %s14_s7, [#allocation3], %s741_s9, %s741_s9, %s742_s10  }
   0xd   :  { %736 = dma.done.wait [#allocation3], 4096  }
   0xe   :  { %737 = vsyncadd [#allocation3], 4294963200  ;;  %v23_v0 = vld [vmem:[#allocation2] sm:$0xff]  ;;  %v25_v1 = vld [vmem:[#allocation2 + $0x10] sm:$0xff]  ;;  %s743_s0 = smov [#allocation5]  }
   0xf   :  { %v27_v2 = vld [vmem:[#allocation2 + $0x20] sm:$0xff]  ;;  %v29_v3 = vld [vmem:[#allocation2 + $0x30] sm:$0xff]  ;;  %v55_v6 = vmul.f32 0.054488685, %v23_v0  ;;  %v57_v7 = vmul.f32 0.054488685, %v25_v1 }
  0x10   :  { %v31_v4 = vld [vmem:[#allocation2 + $0x40] sm:$0xff]  ;;  %v33_v5 = vld [vmem:[#allocation2 + $0x50] sm:$0xff]  ;;  %v59_v8 = vmul.f32 0.054488685, %v27_v2  ;;  %v61_v9 = vmul.f32 0.054488685, %v29_v3 }
  0x11   :  { %v63_v10 = vmul.f32 0.054488685, %v31_v4  ;;  %v65_v11 = vmul.f32 0.054488685, %v33_v5  ;;  %v87_v12 = vld [vmem:[#allocation2 + $0x1] sm:$0xff]  ;;  %v89_v13 = vld [vmem:[#allocation2 + $0x11] sm:$0xff] }
  0x12   :  { %v91_v14 = vld [vmem:[#allocation2 + $0x21] sm:$0xff]  ;;  %v93_v15 = vld [vmem:[#allocation2 + $0x31] sm:$0xff]  ;;  %v119_v17 = vmul.f32 0.24420135, %v87_v12  ;;  %v121_v19 = vmul.f32 0.24420135, %v89_v13 }
  0x13   :  { %v95_v16 = vld [vmem:[#allocation2 + $0x41] sm:$0xff]  ;;  %v97_v18 = vld [vmem:[#allocation2 + $0x51] sm:$0xff]  ;;  %v123_v20 = vmul.f32 0.24420135, %v91_v14  ;;  %v125_v22 = vmul.f32 0.24420135, %v93_v15 }
  0x14   :  { %v183_v21 = vld [vmem:[#allocation2 + $0x2] sm:$0xff]  ;;  %v127_v23 = vmul.f32 0.24420135, %v95_v16  ;;  %v129_v24 = vmul.f32 0.24420135, %v97_v18  ;;  %v151_v25 = vadd.f32 %v119_v17, %v55_v6  ;;  %v153_v26 = vadd.f32 %v121_v19, %v57_v7  ;;  %v185_v28 = vld [vmem:[#allocation2 + $0x12] sm:$0xff] }
  0x15   :  { %v155_v27 = vadd.f32 %v123_v20, %v59_v8  ;;  %v187_v29 = vld [vmem:[#allocation2 + $0x22] sm:$0xff]  ;;  %v189_v30 = vld [vmem:[#allocation2 + $0x32] sm:$0xff]  ;;  %v215_v31 = vmul.f32 0.40261996, %v183_v21  ;;  %v157_v32 = vadd.f32 %v125_v22, %v61_v9  ;;  %v217_v37 = vmul.f32 0.40261996, %v185_v28 }
  0x16   :  { %v159_v33 = vadd.f32 %v127_v23, %v63_v10  ;;  %v161_v34 = vadd.f32 %v129_v24, %v65_v11  ;;  %v191_v35 = vld [vmem:[#allocation2 + $0x42] sm:$0xff]  ;;  %v193_v36 = vld [vmem:[#allocation2 + $0x52] sm:$0xff]  ;;  %v219_v39 = vmul.f32 0.40261996, %v187_v29  ;;  %v221_v40 = vmul.f32 0.40261996, %v189_v30 }
  0x17   :  { %v279_v38 = vld [vmem:[#allocation2 + $0x3] sm:$0xff]  ;;  %v223_v41 = vmul.f32 0.40261996, %v191_v35  ;;  %v247_v42 = vadd.f32 %v215_v31, %v151_v25  ;;  %v225_v43 = vmul.f32 0.40261996, %v193_v36  ;;  %v249_v44 = vadd.f32 %v217_v37, %v153_v26  ;;  %v281_v45 = vld [vmem:[#allocation2 + $0x13] sm:$0xff] }
  0x18   :  { %v283_v46 = vld [vmem:[#allocation2 + $0x23] sm:$0xff]  ;;  %v285_v47 = vld [vmem:[#allocation2 + $0x33] sm:$0xff]  ;;  %v251_v48 = vadd.f32 %v219_v39, %v155_v27  ;;  %v253_v49 = vadd.f32 %v221_v40, %v157_v32  ;;  %v311_v53 = vmul.f32 0.24420135, %v279_v38  ;;  %v313_v56 = vmul.f32 0.24420135, %v281_v45 }
  0x19   :  { %v255_v50 = vadd.f32 %v223_v41, %v159_v33  ;;  %v287_v51 = vld [vmem:[#allocation2 + $0x43] sm:$0xff]  ;;  %v289_v52 = vld [vmem:[#allocation2 + $0x53] sm:$0xff]  ;;  %v257_v55 = vadd.f32 %v225_v43, %v161_v34  ;;  %v315_v57 = vmul.f32 0.24420135, %v283_v46  ;;  %v317_v58 = vmul.f32 0.24420135, %v285_v47 }
  0x1a   :  { %v375_v54 = vld [vmem:[#allocation2 + $0x4] sm:$0xff]  ;;  %v319_v59 = vmul.f32 0.24420135, %v287_v51  ;;  %v321_v60 = vmul.f32 0.24420135, %v289_v52  ;;  %v343_v61 = vadd.f32 %v311_v53, %v247_v42  ;;  %v377_v62 = vld [vmem:[#allocation2 + $0x14] sm:$0xff]  ;;  %v345_v0 = vadd.f32 %v313_v56, %v249_v44 }
  0x1b   :  { %v379_v63 = vld [vmem:[#allocation2 + $0x24] sm:$0xff]  ;;  %v347_v1 = vadd.f32 %v315_v57, %v251_v48  ;;  %v349_v2 = vadd.f32 %v317_v58, %v253_v49  ;;  %v381_v3 = vld [vmem:[#allocation2 + $0x34] sm:$0xff]  ;;  %v407_v6 = vmul.f32 0.054488685, %v375_v54  ;;  %v409_v9 = vmul.f32 0.054488685, %v377_v62 }
  0x1c   :  { %v383_v4 = vld [vmem:[#allocation2 + $0x44] sm:$0xff]  ;;  %v385_v5 = vld [vmem:[#allocation2 + $0x54] sm:$0xff]  ;;  %v351_v7 = vadd.f32 %v319_v59, %v255_v50  ;;  %v353_v8 = vadd.f32 %v321_v60, %v257_v55  ;;  %v411_v10 = vmul.f32 0.054488685, %v379_v63  ;;  %v413_v12 = vmul.f32 0.054488685, %v381_v3 }
  0x1d   :  { %v24_v11 = vld [vmem:[#allocation2 + $0x8] sm:$0xf]  ;;  %v415_v13 = vmul.f32 0.054488685, %v383_v4  ;;  %v417_v14 = vmul.f32 0.054488685, %v385_v5  ;;  %v439_v15 = vadd.f32 %v407_v6, %v343_v61  ;;  %v760_v16 = vadd.f32 %v409_v9, %v345_v0 }
  0x1e   :  { %v762_v17 = vadd.f32 %v411_v10, %v347_v1  ;;  %v26_v18 = vld [vmem:[#allocation2 + $0x18] sm:$0xf]  ;;  %v28_v19 = vld [vmem:[#allocation2 + $0x28] sm:$0xf]  ;;  %v764_v21 = vadd.f32 %v413_v12, %v349_v2  ;;  %v56_v29 = vmul.f32 0.054488685, %v24_v11 }
  0x1f   :  { %v30_v20 = vld [vmem:[#allocation2 + $0x38] sm:$0xf]  ;;  %v766_v22 = vadd.f32 %v415_v13, %v351_v7  ;;  %v768_v23 = vadd.f32 %v417_v14, %v353_v8  ;;  %v471_v24 = vmul.f32 0.054488685, %v439_v15  ;;  %v32_v25 = vld [vmem:[#allocation2 + $0x48] sm:$0xf] }
  0x20   :  { %v34_v26 = vld [vmem:[#allocation2 + $0x58] sm:$0xf]  ;;  %v495_v27 = vmul.f32 0.24420135, %v760_v16  ;;  %v543_v28 = vmul.f32 0.40261996, %v762_v17 }
  0x21   :  { %v773_v30 = vmul.f32 0.054488685, %v766_v22  ;;  %v776_v31 = vmul.f32 0.24420135, %v764_v21  ;;  %v779_v32 = vmul.f32 0.24420135, %v768_v23 }
  0x22   :  { %v519_v33 = vadd.f32 %v495_v27, %v471_v24  ;;  %v58_v34 = vmul.f32 0.054488685, %v26_v18  ;;  %v60_v35 = vmul.f32 0.054488685, %v28_v19  ;;  %v62_v36 = vmul.f32 0.054488685, %v30_v20 }
  0x23   :  { %v64_v37 = vmul.f32 0.054488685, %v32_v25  ;;  %v66_v38 = vmul.f32 0.054488685, %v34_v26  ;;  %v88_v39 = vld [vmem:[#allocation2 + $0x9] sm:$0xf] }
  0x24   :  { %v567_v40 = vadd.f32 %v543_v28, %v519_v33  ;;  %v90_v41 = vld [vmem:[#allocation2 + $0x19] sm:$0xf]  ;;  %v92_v42 = vld [vmem:[#allocation2 + $0x29] sm:$0xf]  ;;  %v120_v46 = vmul.f32 0.24420135, %v88_v39 }
  0x25   :  { %v94_v43 = vld [vmem:[#allocation2 + $0x39] sm:$0xf]  ;;  %v96_v44 = vld [vmem:[#allocation2 + $0x49] sm:$0xf]  ;;  %v122_v48 = vmul.f32 0.24420135, %v90_v41 }
  0x26   :  { %v98_v45 = vld [vmem:[#allocation2 + $0x59] sm:$0xf]  ;;  %v595_v47 = vadd.f32 %v567_v40, %v776_v31  ;;  %v124_v49 = vmul.f32 0.24420135, %v92_v42  ;;  %v126_v50 = vmul.f32 0.24420135, %v94_v43  ;;  %v152_v53 = vadd.f32 %v120_v46, %v56_v29 }
  0x27   :  { %v128_v51 = vmul.f32 0.24420135, %v96_v44  ;;  %v130_v52 = vmul.f32 0.24420135, %v98_v45  ;;  %v184_v54 = vld [vmem:[#allocation2 + $0xa] sm:$0xf]  ;;  %v154_v56 = vadd.f32 %v122_v48, %v58_v34 }
  0x28   :  { %v627_v55 = vadd.f32 %v595_v47, %v773_v30  ;;  %v156_v57 = vadd.f32 %v124_v49, %v60_v35  ;;  %v158_v58 = vadd.f32 %v126_v50, %v62_v36  ;;  %v186_v59 = vld [vmem:[#allocation2 + $0x1a] sm:$0xf]  ;;  %v188_v60 = vld [vmem:[#allocation2 + $0x2a] sm:$0xf]  ;;  %v216_v2 = vmul.f32 0.40261996, %v184_v54 }
  0x29   :  { %v190_v61 = vld [vmem:[#allocation2 + $0x3a] sm:$0xf]  ;;  %v160_v62 = vadd.f32 %v128_v51, %v64_v37  ;;  %v162_v63 = vadd.f32 %v130_v52, %v66_v38  ;;  %v192_v0 = vld [vmem:[#allocation2 + $0x4a] sm:$0xf]  ;;  %v218_v3 = vmul.f32 0.40261996, %v186_v59 }
  0x2a   :  { %v194_v1 = vld [vmem:[#allocation2 + $0x5a] sm:$0xf]  ;;  %651 = vst [vmem:[#allocation5] sm:$0xff] %v627_v55  ;;  %v220_v4 = vmul.f32 0.40261996, %v188_v60  ;;  %v248_v8 = vadd.f32 %v216_v2, %v152_v53  ;;  %v35_v53 = vld [vmem:[#allocation2 + $0x60] sm:$0xff] }
  0x2b   :  { %v222_v5 = vmul.f32 0.40261996, %v190_v61  ;;  %v224_v6 = vmul.f32 0.40261996, %v192_v0  ;;  %v226_v7 = vmul.f32 0.40261996, %v194_v1  ;;  %v250_v10 = vadd.f32 %v218_v3, %v154_v56 }
  0x2c   :  { %v280_v9 = vld [vmem:[#allocation2 + $0xb] sm:$0xf]  ;;  %v252_v11 = vadd.f32 %v220_v4, %v156_v57  ;;  %v282_v13 = vld [vmem:[#allocation2 + $0x1b] sm:$0xf]  ;;  %v99_v54 = vld [vmem:[#allocation2 + $0x61] sm:$0xff]  ;;  %s680_s13 = sshll.u32 %s743_s0, 4  ;;  %s681_s13 = int_to_ptr.vmem [resolvable:$true] %s680_s13 }
  0x2d   :  { %v254_v12 = vadd.f32 %v222_v5, %v158_v58  ;;  %v284_v14 = vld [vmem:[#allocation2 + $0x2b] sm:$0xf]  ;;  %v286_v15 = vld [vmem:[#allocation2 + $0x3b] sm:$0xf]  ;;  %v256_v18 = vadd.f32 %v224_v6, %v160_v62  ;;  %v258_v19 = vadd.f32 %v226_v7, %v162_v63  ;;  %v312_v25 = vmul.f32 0.24420135, %v280_v9  ;;  %p721_p6 = scmp.lt.s32.totalorder %s681_s13, %s681_s13 }
  0x2e   :  { %v288_v20 = vld [vmem:[#allocation2 + $0x4b] sm:$0xf]  ;;  %v290_v24 = vld [vmem:[#allocation2 + $0x5b] sm:$0xf]  ;;  %v314_v26 = vmul.f32 0.24420135, %v282_v13 }
  0x2f   :  { %v316_v27 = vmul.f32 0.24420135, %v284_v14  ;;  %v318_v28 = vmul.f32 0.24420135, %v286_v15  ;;  %v320_v29 = vmul.f32 0.24420135, %v288_v20  ;;  %v344_v34 = vadd.f32 %v312_v25, %v248_v8 }
  0x30   :  { %v322_v33 = vmul.f32 0.24420135, %v290_v24  ;;  %v376_v35 = vld [vmem:[#allocation2 + $0xc] sm:$0xf]  ;;  %v346_v36 = vadd.f32 %v314_v26, %v250_v10  ;;  %v378_v39 = vld [vmem:[#allocation2 + $0x1c] sm:$0xf] }
  0x31   :  { %v348_v37 = vadd.f32 %v316_v27, %v252_v11  ;;  %v350_v38 = vadd.f32 %v318_v28, %v254_v12  ;;  %v380_v40 = vld [vmem:[#allocation2 + $0x2c] sm:$0xf]  ;;  %v382_v41 = vld [vmem:[#allocation2 + $0x3c] sm:$0xf]  ;;  %v352_v42 = vadd.f32 %v320_v29, %v256_v18  ;;  %v408_v46 = vmul.f32 0.054488685, %v376_v35 }
  0x32   :  { %v354_v43 = vadd.f32 %v322_v33, %v258_v19  ;;  %v384_v44 = vld [vmem:[#allocation2 + $0x4c] sm:$0xf]  ;;  %v386_v45 = vld [vmem:[#allocation2 + $0x5c] sm:$0xf]  ;;  %v410_v47 = vmul.f32 0.054488685, %v378_v39 }
  0x33   :  { %v412_v48 = vmul.f32 0.054488685, %v380_v40  ;;  %v414_v49 = vmul.f32 0.054488685, %v382_v41  ;;  %v416_v50 = vmul.f32 0.054488685, %v384_v44  ;;  %v440_v52 = vadd.f32 %v408_v46, %v344_v34 }
  0x34   :  { %v418_v51 = vmul.f32 0.054488685, %v386_v45  ;;  %v442_v55 = vadd.f32 %v410_v47, %v346_v36  ;;  %v67_v58 = vmul.f32 0.054488685, %v35_v53  ;;  %v195_v59 = vld [vmem:[#allocation2 + $0x62] sm:$0xff]  ;;  %v197_v44 = vld [vmem:[#allocation2 + $0x72] sm:$0xff] }
  0x35   :  { %v783_v56 = vadd.f32 %v412_v48, %v348_v37  ;;  %v785_v57 = vadd.f32 %v414_v49, %v350_v38  ;;  %v291_v60 = vld [vmem:[#allocation2 + $0x63] sm:$0xff]  ;;  %v787_v62 = vadd.f32 %v416_v50, %v352_v42  ;;  %v472_v0 = vmul.f32 0.054488685, %v440_v52  ;;  %v292_v34 = vld [vmem:[#allocation2 + $0x6b] sm:$0xf]  ;;  %v37_v42 = vld [vmem:[#allocation2 + $0x70] sm:$0xff] }
  0x36   :  { %v387_v61 = vld [vmem:[#allocation2 + $0x64] sm:$0xff]  ;;  %v789_v63 = vadd.f32 %v418_v51, %v354_v43  ;;  %v131_v1 = vmul.f32 0.24420135, %v99_v54  ;;  %v496_v3 = vmul.f32 0.24420135, %v442_v55  ;;  %v101_v43 = vld [vmem:[#allocation2 + $0x71] sm:$0xff] }
  0x37   :  { %v36_v2 = vld [vmem:[#allocation2 + $0x68] sm:$0xf]  ;;  %v792_v4 = vmul.f32 0.24420135, %v785_v57  ;;  %v544_v5 = vmul.f32 0.40261996, %v783_v56 }
  0x38   :  { %v796_v6 = vmul.f32 0.054488685, %v787_v62  ;;  %v799_v7 = vmul.f32 0.24420135, %v789_v63  ;;  %v163_v8 = vadd.f32 %v131_v1, %v67_v58  ;;  %v227_v9 = vmul.f32 0.40261996, %v195_v59 }
  0x39   :  { %v520_v10 = vadd.f32 %v496_v3, %v472_v0  ;;  %v323_v11 = vmul.f32 0.24420135, %v291_v60  ;;  %v419_v12 = vmul.f32 0.054488685, %v387_v61  ;;  %v473_v13 = vmul.f32 0.054488685, %v760_v16 }
  0x3a   :  { %v259_v14 = vadd.f32 %v227_v9, %v163_v8  ;;  %v803_v15 = vmul.f32 0.054488685, %v768_v23  ;;  %v497_v18 = vmul.f32 0.24420135, %v762_v17  ;;  %v100_v19 = vld [vmem:[#allocation2 + $0x69] sm:$0xf]  ;;  %v828_v61 = vadd.f32 %v779_v32, %v773_v30 }
  0x3b   :  { %v568_v20 = vadd.f32 %v544_v5, %v520_v10  ;;  %v807_v24 = vmul.f32 0.24420135, %v766_v22  ;;  %v545_v25 = vmul.f32 0.40261996, %v764_v21  ;;  %v68_v26 = vmul.f32 0.054488685, %v36_v2 }
  0x3c   :  { %v355_v27 = vadd.f32 %v323_v11, %v259_v14  ;;  %v521_v28 = vadd.f32 %v497_v18, %v473_v13  ;;  %v132_v29 = vmul.f32 0.24420135, %v100_v19  ;;  %v196_v33 = vld [vmem:[#allocation2 + $0x6a] sm:$0xf]  ;;  %v324_v36 = vmul.f32 0.24420135, %v292_v34 }
  0x3d   :  { %v596_v16 = vadd.f32 %v568_v20, %v792_v4  ;;  %v228_v35 = vmul.f32 0.40261996, %v196_v33  ;;  %v388_v37 = vld [vmem:[#allocation2 + $0x6c] sm:$0xf]  ;;  %v474_v46 = vmul.f32 0.054488685, %v442_v55 }
  0x3e   :  { %v811_v38 = vadd.f32 %v419_v12, %v355_v27  ;;  %v569_v39 = vadd.f32 %v545_v25, %v521_v28  ;;  %v164_v40 = vadd.f32 %v132_v29, %v68_v26  ;;  %v420_v41 = vmul.f32 0.054488685, %v388_v37  ;;  %v293_v53 = vld [vmem:[#allocation2 + $0x73] sm:$0xff]  ;;  %v294_v27 = vld [vmem:[#allocation2 + $0x7b] sm:$0xf]  ;;  %v39_v37 = vld [vmem:[#allocation2 + $0x80] sm:$0xff] }
  0x3f   :  { %v628_v45 = vadd.f32 %v596_v16, %v796_v6  ;;  %v815_v47 = vmul.f32 0.054488685, %v789_v63  ;;  %v498_v48 = vmul.f32 0.24420135, %v783_v56  ;;  %v823_v52 = vmul.f32 0.24420135, %v787_v62 }
  0x40   :  { %v819_v49 = vmul.f32 0.24420135, %v811_v38  ;;  %v597_v50 = vadd.f32 %v569_v39, %v807_v24  ;;  %v260_v51 = vadd.f32 %v228_v35, %v164_v40  ;;  %v389_v54 = vld [vmem:[#allocation2 + $0x74] sm:$0xff]  ;;  %v546_v55 = vmul.f32 0.40261996, %v785_v57  ;;  %v103_v39 = vld [vmem:[#allocation2 + $0x81] sm:$0xff] }
  0x41   :  { %652 = vst [vmem:[#allocation5 + $0x8] sm:$0xf] %v628_v45  ;;  %v522_v58 = vadd.f32 %v498_v48, %v474_v46  ;;  %v69_v59 = vmul.f32 0.054488685, %v37_v42  ;;  %v133_v60 = vmul.f32 0.24420135, %v101_v43  ;;  %v847_v40 = vadd.f32 %v799_v7, %v796_v6 }
  0x42   :  { %v629_v0 = vadd.f32 %v597_v50, %v803_v15  ;;  %v356_v1 = vadd.f32 %v324_v36, %v260_v51  ;;  %v229_v2 = vmul.f32 0.40261996, %v197_v44  ;;  %v38_v3 = vld [vmem:[#allocation2 + $0x78] sm:$0xf]  ;;  %v325_v10 = vmul.f32 0.24420135, %v293_v53 }
  0x43   :  { %v102_v5 = vld [vmem:[#allocation2 + $0x79] sm:$0xf]  ;;  %v570_v8 = vadd.f32 %v546_v55, %v522_v58  ;;  %v165_v9 = vadd.f32 %v133_v60, %v69_v59  ;;  %v421_v11 = vmul.f32 0.054488685, %v389_v54  ;;  %v475_v14 = vmul.f32 0.054488685, %v762_v17 }
  0x44   :  { %v198_v12 = vld [vmem:[#allocation2 + $0x7a] sm:$0xf]  ;;  %653 = vst [vmem:[#allocation5 + $0x10] sm:$0xff] %v629_v0  ;;  %v831_v13 = vadd.f32 %v420_v41, %v356_v1  ;;  %v835_v18 = vmul.f32 0.054488685, %v811_v38  ;;  %v295_v44 = vld [vmem:[#allocation2 + $0x83] sm:$0xff] }
  0x45   :  { %v547_v30 = vmul.f32 0.40261996, %v766_v22  ;;  %v598_v19 = vadd.f32 %v570_v8, %v823_v52  ;;  %v261_v20 = vadd.f32 %v229_v2, %v165_v9  ;;  %v70_v25 = vmul.f32 0.054488685, %v38_v3  ;;  %v390_v36 = vld [vmem:[#allocation2 + $0x7c] sm:$0xf] }
  0x46   :  { %v134_v26 = vmul.f32 0.24420135, %v102_v5  ;;  %v840_v28 = vmul.f32 0.24420135, %v831_v13  ;;  %v523_v29 = vadd.f32 %v776_v31, %v475_v14  ;;  %v230_v33 = vmul.f32 0.40261996, %v198_v12 }
  0x47   :  { %v326_v34 = vmul.f32 0.24420135, %v294_v27  ;;  %v630_v17 = vadd.f32 %v598_v19, %v815_v47  ;;  %v357_v16 = vadd.f32 %v325_v10, %v261_v20  ;;  %v476_v22 = vmul.f32 0.054488685, %v783_v56  ;;  %v199_v31 = vld [vmem:[#allocation2 + $0x82] sm:$0xff]  ;;  %v41_v14 = vld [vmem:[#allocation2 + $0x90] sm:$0xff] }
  0x48   :  { %v166_v35 = vadd.f32 %v134_v26, %v70_v25  ;;  %v571_v41 = vadd.f32 %v547_v30, %v523_v29  ;;  %v422_v42 = vmul.f32 0.054488685, %v390_v36  ;;  %v850_v43 = vmul.f32 0.054488685, %v831_v13  ;;  %v391_v50 = vld [vmem:[#allocation2 + $0x84] sm:$0xff]  ;;  %v105_v25 = vld [vmem:[#allocation2 + $0x91] sm:$0xff] }
  0x49   :  { %654 = vst [vmem:[#allocation5 + $0x18] sm:$0xf] %v630_v17  ;;  %v852_v45 = vadd.f32 %v421_v11, %v357_v16  ;;  %v524_v48 = vadd.f32 %v792_v4, %v476_v22  ;;  %v548_v56 = vmul.f32 0.40261996, %v787_v62  ;;  %v40_v51 = vld [vmem:[#allocation2 + $0x88] sm:$0xf] }
  0x4a   :  { %v262_v46 = vadd.f32 %v230_v33, %v166_v35  ;;  %v599_v6 = vadd.f32 %v571_v41, %v779_v32  ;;  %v71_v53 = vmul.f32 0.054488685, %v39_v37  ;;  %v135_v54 = vmul.f32 0.24420135, %v103_v39  ;;  %v104_v1 = vld [vmem:[#allocation2 + $0x89] sm:$0xf] }
  0x4b   :  { %v231_v58 = vmul.f32 0.40261996, %v199_v31  ;;  %v858_v55 = vmul.f32 0.24420135, %v852_v45  ;;  %v572_v60 = vadd.f32 %v548_v56, %v524_v48  ;;  %v327_v0 = vmul.f32 0.24420135, %v295_v44 }
  0x4c   :  { %v358_v59 = vadd.f32 %v326_v34, %v262_v46  ;;  %v631_v2 = vadd.f32 %v599_v6, %v835_v18  ;;  %v167_v3 = vadd.f32 %v135_v54, %v71_v53  ;;  %v423_v4 = vmul.f32 0.054488685, %v391_v50  ;;  %v200_v5 = vld [vmem:[#allocation2 + $0x8a] sm:$0xf]  ;;  %v297_v35 = vld [vmem:[#allocation2 + $0x93] sm:$0xff]  ;;  %s716_s14 = scalar_lea.vmem %s681_s13, 3072 }
  0x4d   :  { %v477_v62 = vmul.f32 0.054488685, %v764_v21  ;;  %v864_v32 = vadd.f32 %v819_v49, %v803_v15  ;;  %v600_v9 = vadd.f32 %v572_v60, %v799_v7  ;;  %v870_v10 = vmul.f32 0.054488685, %v852_v45  ;;  %v296_v11 = vld [vmem:[#allocation2 + $0x8b] sm:$0xf]  ;;  %p717_p5 = scmp.ne.s32.totalorder %s681_s13, %s716_s14  ;;  %p722_p7 = scmp.lt.s32.totalorder %s716_s14, %s716_s14 }
  0x4e   :  { %v866_v8 = vadd.f32 %v422_v42, %v358_v59  ;;  %v392_v12 = vld [vmem:[#allocation2 + $0x8c] sm:$0xf]  ;;  %655 = vst [vmem:[#allocation5 + $0x20] sm:$0xff] %v631_v2  ;;  %v263_v30 = vadd.f32 %v231_v58, %v167_v3  ;;  %v549_v21 = vmul.f32 0.40261996, %v768_v23  ;;  %v201_v15 = vld [vmem:[#allocation2 + $0x92] sm:$0xff] }
  0x4f   :  { %v525_v19 = vadd.f32 %v807_v24, %v477_v62  ;;  %v72_v20 = vmul.f32 0.054488685, %v40_v51  ;;  %v632_v7 = vadd.f32 %v600_v9, %v850_v43  ;;  %v136_v27 = vmul.f32 0.24420135, %v104_v1  ;;  %v393_v36 = vld [vmem:[#allocation2 + $0x94] sm:$0xff]  ;;  %p723_p8 = por %p722_p7, %p721_p6 }
  0x50   :  { %v875_v26 = vmul.f32 0.24420135, %v866_v8  ;;  %v232_v29 = vmul.f32 0.40261996, %v200_v5  ;;  %v359_v33 = vadd.f32 %v327_v0, %v263_v30  ;;  %v328_v17 = vmul.f32 0.24420135, %v296_v11 }
  0x51   :  { %v573_v34 = vadd.f32 %v549_v21, %v525_v19  ;;  %v424_v16 = vmul.f32 0.054488685, %v392_v12  ;;  %v880_v24 = vadd.f32 %v840_v28, %v815_v47  ;;  %656 = vst [vmem:[#allocation5 + $0x28] sm:$0xf] %v632_v7  ;;  %v168_v23 = vadd.f32 %v136_v27, %v72_v20  ;;  %v42_v39 = vld [vmem:[#allocation2 + $0x98] sm:$0xf]  ;;  %p724_p9 = pnand %p723_p8, %p717_p5 }
  0x52   :  { %v478_v22 = vmul.f32 0.054488685, %v785_v57  ;;  %v884_v37 = vmul.f32 0.054488685, %v866_v8  ;;  %v886_v41 = vadd.f32 %v423_v4, %v359_v33  ;;  %v550_v31 = vmul.f32 0.40261996, %v789_v63 }
  0x53   :  { %v601_v42 = vadd.f32 %v573_v34, %v819_v49  ;;  %v73_v44 = vmul.f32 0.054488685, %v41_v14  ;;  %v106_v46 = vld [vmem:[#allocation2 + $0x99] sm:$0xf]  ;;  %v264_v48 = vadd.f32 %v232_v29, %v168_v23  ;;  %v137_v56 = vmul.f32 0.24420135, %v105_v25 }
  0x54   :  { %v526_v47 = vadd.f32 %v823_v52, %v478_v22  ;;  %v233_v50 = vmul.f32 0.40261996, %v201_v15  ;;  %v202_v51 = vld [vmem:[#allocation2 + $0x9a] sm:$0xf]  ;;  %v892_v57 = vmul.f32 0.24420135, %v886_v41  ;;  %v900_v52 = vadd.f32 %v858_v55, %v835_v18 }
  0x55   :  { %v633_v6 = vadd.f32 %v601_v42, %v870_v10  ;;  %v329_v53 = vmul.f32 0.24420135, %v297_v35  ;;  %v425_v54 = vmul.f32 0.054488685, %v393_v36  ;;  %v360_v58 = vadd.f32 %v328_v17, %v264_v48  ;;  %v298_v60 = vld [vmem:[#allocation2 + $0x9b] sm:$0xf] }
  0x56   :  { %v574_v59 = vadd.f32 %v550_v31, %v526_v47  ;;  %v169_v49 = vadd.f32 %v137_v56, %v73_v44  ;;  %v896_v63 = vmul.f32 0.054488685, %v886_v41  ;;  %v394_v0 = vld [vmem:[#allocation2 + $0x9c] sm:$0xf]  ;;  %v551_v1 = vmul.f32 0.40261996, %v811_v38 }
  0x57   :  { %657 = vst [vmem:[#allocation5 + $0x30] sm:$0xff] %v633_v6  ;;  %v74_v2 = vmul.f32 0.054488685, %v42_v39  ;;  %v138_v3 = vmul.f32 0.24420135, %v106_v46  ;;  %v903_v4 = vadd.f32 %v424_v16, %v360_v58  ;;  %v43_v11 = vld [vmem:[#allocation2 + $0xa0] sm:$0xff]  ;;  %v918_v34 = vadd.f32 %v875_v26, %v850_v43 }
  0x58   :  { %v602_v62 = vadd.f32 %v574_v59, %v840_v28  ;;  %v265_v5 = vadd.f32 %v233_v50, %v169_v49  ;;  %v234_v9 = vmul.f32 0.40261996, %v202_v51  ;;  %v575_v12 = vadd.f32 %v551_v1, %v828_v61  ;;  %v107_v21 = vld [vmem:[#allocation2 + $0xa1] sm:$0xff]  ;;  %v108_v42 = vld [vmem:[#allocation2 + $0xa9] sm:$0xf]  ;;  %v45_v58 = vld [vmem:[#allocation2 + $0xb0] sm:$0xff] }
  0x59   :  { %v170_v14 = vadd.f32 %v138_v3, %v74_v2  ;;  %v330_v30 = vmul.f32 0.24420135, %v298_v60  ;;  %v426_v19 = vmul.f32 0.054488685, %v394_v0  ;;  %v203_v18 = vld [vmem:[#allocation2 + $0xa2] sm:$0xff]  ;;  %v926_v31 = vadd.f32 %v892_v57, %v870_v10  ;;  %v205_v0 = vld [vmem:[#allocation2 + $0xb2] sm:$0xff] }
  0x5a   :  { %v908_v20 = vmul.f32 0.24420135, %v903_v4  ;;  %v634_v38 = vadd.f32 %v602_v62, %v884_v37  ;;  %v361_v25 = vadd.f32 %v329_v53, %v265_v5  ;;  %v912_v15 = vmul.f32 0.054488685, %v903_v4  ;;  %v299_v28 = vld [vmem:[#allocation2 + $0xa3] sm:$0xff]  ;;  %v301_v62 = vld [vmem:[#allocation2 + $0xb3] sm:$0xff] }
  0x5b   :  { %v603_v7 = vadd.f32 %v575_v12, %v858_v55  ;;  %v266_v27 = vadd.f32 %v234_v9, %v170_v14  ;;  %v552_v61 = vmul.f32 0.40261996, %v831_v13  ;;  %v75_v29 = vmul.f32 0.054488685, %v43_v11  ;;  %v395_v33 = vld [vmem:[#allocation2 + $0xa4] sm:$0xff]  ;;  %v397_v5 = vld [vmem:[#allocation2 + $0xb4] sm:$0xff] }
  0x5c   :  { %658 = vst [vmem:[#allocation5 + $0x38] sm:$0xf] %v634_v38  ;;  %v920_v17 = vadd.f32 %v425_v54, %v361_v25  ;;  %v139_v16 = vmul.f32 0.24420135, %v107_v21  ;;  %v235_v35 = vmul.f32 0.40261996, %v203_v18  ;;  %v937_v6 = vadd.f32 %v908_v20, %v884_v37 }
  0x5d   :  { %v44_v36 = vld [vmem:[#allocation2 + $0xa8] sm:$0xf]  ;;  %v635_v23 = vadd.f32 %v603_v7, %v896_v63  ;;  %v362_v22 = vadd.f32 %v330_v30, %v266_v27  ;;  %v576_v55 = vadd.f32 %v552_v61, %v847_v40  ;;  %v331_v39 = vmul.f32 0.24420135, %v299_v28  ;;  %v396_v51 = vld [vmem:[#allocation2 + $0xac] sm:$0xf] }
  0x5e   :  { %v204_v13 = vld [vmem:[#allocation2 + $0xaa] sm:$0xf]  ;;  %v929_v43 = vmul.f32 0.24420135, %v920_v17  ;;  %v171_v44 = vadd.f32 %v139_v16, %v75_v29  ;;  %v427_v46 = vmul.f32 0.054488685, %v395_v33 }
  0x5f   :  { %v300_v48 = vld [vmem:[#allocation2 + $0xab] sm:$0xf]  ;;  %659 = vst [vmem:[#allocation5 + $0x40] sm:$0xff] %v635_v23  ;;  %v931_v47 = vadd.f32 %v426_v19, %v362_v22  ;;  %v604_v56 = vadd.f32 %v576_v55, %v875_v26  ;;  %v553_v40 = vmul.f32 0.40261996, %v852_v45  ;;  %v109_v45 = vld [vmem:[#allocation2 + $0xb1] sm:$0xff] }
  0x60   :  { %v76_v50 = vmul.f32 0.054488685, %v44_v36  ;;  %v267_v10 = vadd.f32 %v235_v35, %v171_v44  ;;  %v140_v53 = vmul.f32 0.24420135, %v108_v42  ;;  %v236_v54 = vmul.f32 0.40261996, %v204_v13 }
  0x61   :  { %v940_v59 = vmul.f32 0.24420135, %v931_v47  ;;  %v636_v49 = vadd.f32 %v604_v56, %v912_v15  ;;  %v489_v60 = vmul.f32 0.054488685, %v920_v17  ;;  %v577_v26 = vadd.f32 %v553_v40, %v864_v32  ;;  %v46_v30 = vld [vmem:[#allocation2 + $0xb8] sm:$0xf] }
  0x62   :  { %v363_v1 = vadd.f32 %v331_v39, %v267_v10  ;;  %v172_v2 = vadd.f32 %v140_v53, %v76_v50  ;;  %v332_v3 = vmul.f32 0.24420135, %v300_v48  ;;  %v428_v37 = vmul.f32 0.054488685, %v396_v51  ;;  %v110_v38 = vld [vmem:[#allocation2 + $0xb9] sm:$0xf] }
  0x63   :  { %v947_v9 = vadd.f32 %v929_v43, %v896_v63  ;;  %660 = vst [vmem:[#allocation5 + $0x48] sm:$0xf] %v636_v49  ;;  %v605_v11 = vadd.f32 %v577_v26, %v892_v57  ;;  %v554_v12 = vmul.f32 0.40261996, %v866_v8  ;;  %v77_v14 = vmul.f32 0.054488685, %v45_v58 }
  0x64   :  { %v951_v32 = vadd.f32 %v427_v46, %v363_v1  ;;  %v268_v19 = vadd.f32 %v236_v54, %v172_v2  ;;  %v141_v21 = vmul.f32 0.24420135, %v109_v45  ;;  %v237_v18 = vmul.f32 0.40261996, %v205_v0  ;;  %v206_v27 = vld [vmem:[#allocation2 + $0xba] sm:$0xf] }
  0x65   :  { %v637_v25 = vadd.f32 %v605_v11, %v489_v60  ;;  %v490_v28 = vmul.f32 0.054488685, %v931_v47  ;;  %v578_v7 = vadd.f32 %v554_v12, %v880_v24  ;;  %v333_v63 = vmul.f32 0.24420135, %v301_v62  ;;  %v302_v33 = vld [vmem:[#allocation2 + $0xbb] sm:$0xf] }
  0x66   :  { %v957_v57 = vadd.f32 %v940_v59, %v912_v15  ;;  %v364_v8 = vadd.f32 %v332_v3, %v268_v19  ;;  %v173_v61 = vadd.f32 %v141_v21, %v77_v14  ;;  %v429_v29 = vmul.f32 0.054488685, %v397_v5  ;;  %v398_v16 = vld [vmem:[#allocation2 + $0xbc] sm:$0xf]  ;;  %v47_v15 = vld [vmem:[#allocation2 + $0xc0] sm:$0xff] }
  0x67   :  { %661 = vst [vmem:[#allocation5 + $0x50] sm:$0xff] %v637_v25  ;;  %v606_v35 = vadd.f32 %v578_v7, %v908_v20  ;;  %v555_v36 = vmul.f32 0.40261996, %v886_v41  ;;  %v78_v23 = vmul.f32 0.054488685, %v46_v30  ;;  %v111_v56 = vld [vmem:[#allocation2 + $0xc1] sm:$0xff] }
  0x68   :  { %v142_v22 = vmul.f32 0.24420135, %v110_v38  ;;  %v513_v24 = vmul.f32 0.24420135, %v951_v32  ;;  %v962_v55 = vadd.f32 %v428_v37, %v364_v8  ;;  %v269_v39 = vadd.f32 %v237_v18, %v173_v61  ;;  %v207_v40 = vld [vmem:[#allocation2 + $0xc2] sm:$0xff] }
  0x69   :  { %v238_v42 = vmul.f32 0.40261996, %v206_v27  ;;  %v638_v13 = vadd.f32 %v606_v35, %v490_v28  ;;  %v579_v44 = vadd.f32 %v555_v36, %v900_v52  ;;  %v334_v48 = vmul.f32 0.24420135, %v302_v33  ;;  %v303_v49 = vld [vmem:[#allocation2 + $0xc3] sm:$0xff]  ;;  %v49_v33 = vld [vmem:[#allocation2 + $0xd0] sm:$0xff] }
  0x6a   :  { %v174_v46 = vadd.f32 %v142_v22, %v78_v23  ;;  %v966_v20 = vmul.f32 0.24420135, %v962_v55  ;;  %v365_v41 = vadd.f32 %v333_v63, %v269_v39  ;;  %v491_v50 = vmul.f32 0.054488685, %v951_v32  ;;  %v399_v52 = vld [vmem:[#allocation2 + $0xc4] sm:$0xff]  ;;  %v113_v36 = vld [vmem:[#allocation2 + $0xd1] sm:$0xff] }
  0x6b   :  { %v430_v51 = vmul.f32 0.054488685, %v398_v16  ;;  %662 = vst [vmem:[#allocation5 + $0x58] sm:$0xf] %v638_v13  ;;  %v607_v10 = vadd.f32 %v579_v44, %v929_v43  ;;  %v556_v54 = vmul.f32 0.40261996, %v903_v4  ;;  %v971_v26 = vadd.f32 %v513_v24, %v489_v60 }
  0x6c   :  { %v270_v53 = vadd.f32 %v238_v42, %v174_v46  ;;  %v79_v58 = vmul.f32 0.054488685, %v47_v15  ;;  %v973_v45 = vadd.f32 %v429_v29, %v365_v41  ;;  %v143_v0 = vmul.f32 0.24420135, %v111_v56  ;;  %v48_v2 = vld [vmem:[#allocation2 + $0xc8] sm:$0xf] }
  0x6d   :  { %v239_v1 = vmul.f32 0.40261996, %v207_v40  ;;  %v639_v3 = vadd.f32 %v607_v10, %v491_v50  ;;  %v976_v62 = vmul.f32 0.054488685, %v962_v55  ;;  %v580_v43 = vadd.f32 %v556_v54, %v918_v34  ;;  %v112_v5 = vld [vmem:[#allocation2 + $0xc9] sm:$0xf] }
  0x6e   :  { %v366_v37 = vadd.f32 %v334_v48, %v270_v53  ;;  %v208_v11 = vld [vmem:[#allocation2 + $0xca] sm:$0xf]  ;;  %v980_v4 = vadd.f32 %v966_v20, %v490_v28  ;;  %v515_v60 = vmul.f32 0.24420135, %v973_v45  ;;  %v175_v12 = vadd.f32 %v143_v0, %v79_v58  ;;  %v209_v46 = vld [vmem:[#allocation2 + $0xd2] sm:$0xff] }
  0x6f   :  { %v335_v14 = vmul.f32 0.24420135, %v303_v49  ;;  %v304_v30 = vld [vmem:[#allocation2 + $0xcb] sm:$0xf]  ;;  %663 = vst [vmem:[#allocation5 + $0x60] sm:$0xff] %v639_v3  ;;  %v608_v21 = vadd.f32 %v580_v43, %v940_v59 }
  0x70   :  { %v983_v19 = vadd.f32 %v430_v51, %v366_v37  ;;  %v557_v18 = vmul.f32 0.40261996, %v920_v17  ;;  %v80_v38 = vmul.f32 0.054488685, %v48_v2  ;;  %v400_v25 = vld [vmem:[#allocation2 + $0xcc] sm:$0xf]  ;;  %v271_v34 = vadd.f32 %v239_v1, %v175_v12 }
  0x71   :  { %v431_v7 = vmul.f32 0.054488685, %v399_v52  ;;  %v144_v63 = vmul.f32 0.24420135, %v112_v5  ;;  %v240_v27 = vmul.f32 0.40261996, %v208_v11  ;;  %v987_v28 = vadd.f32 %v515_v60, %v491_v50 }
  0x72   :  { %v640_v8 = vadd.f32 %v608_v21, %v976_v62  ;;  %v493_v61 = vmul.f32 0.054488685, %v973_v45  ;;  %v581_v29 = vadd.f32 %v557_v18, %v926_v31  ;;  %v516_v16 = vmul.f32 0.24420135, %v983_v19  ;;  %v305_v50 = vld [vmem:[#allocation2 + $0xd3] sm:$0xff]  ;;  %v51_v11 = vld [vmem:[#allocation2 + $0xe0] sm:$0xff] }
  0x73   :  { %v367_v59 = vadd.f32 %v335_v14, %v271_v34  ;;  %v176_v35 = vadd.f32 %v144_v63, %v80_v38  ;;  %v336_v17 = vmul.f32 0.24420135, %v304_v30  ;;  %v432_v22 = vmul.f32 0.054488685, %v400_v25  ;;  %v50_v53 = vld [vmem:[#allocation2 + $0xd8] sm:$0xf] }
  0x74   :  { %664 = vst [vmem:[#allocation5 + $0x68] sm:$0xf] %v640_v8  ;;  %v609_v23 = vadd.f32 %v581_v29, %v513_v24  ;;  %v558_v39 = vmul.f32 0.40261996, %v931_v47  ;;  %v559_v42 = vmul.f32 0.40261996, %v951_v32 }
  0x75   :  { %v995_v15 = vadd.f32 %v431_v7, %v367_v59  ;;  %v272_v13 = vadd.f32 %v240_v27, %v176_v35  ;;  %v560_v44 = vmul.f32 0.40261996, %v962_v55  ;;  %v81_v31 = vmul.f32 0.054488685, %v49_v33  ;;  %v401_v24 = vld [vmem:[#allocation2 + $0xd4] sm:$0xff]  ;;  %v115_v12 = vld [vmem:[#allocation2 + $0xe1] sm:$0xff] }
  0x76   :  { %v641_v48 = vadd.f32 %v609_v23, %v493_v61  ;;  %v582_v56 = vadd.f32 %v558_v39, %v937_v6  ;;  %v583_v40 = vadd.f32 %v559_v42, %v947_v9  ;;  %v145_v41 = vmul.f32 0.24420135, %v113_v36  ;;  %v114_v6 = vld [vmem:[#allocation2 + $0xd9] sm:$0xf]  ;;  %v211_v14 = vld [vmem:[#allocation2 + $0xe2] sm:$0xff] }
  0x77   :  { %v368_v51 = vadd.f32 %v336_v17, %v272_v13  ;;  %v494_v47 = vmul.f32 0.054488685, %v983_v19  ;;  %v619_v32 = vmul.f32 0.054488685, %v995_v15  ;;  %v584_v10 = vadd.f32 %v560_v44, %v957_v57  ;;  %v210_v52 = vld [vmem:[#allocation2 + $0xda] sm:$0xf] }
  0x78   :  { %665 = vst [vmem:[#allocation5 + $0x70] sm:$0xff] %v641_v48  ;;  %v610_v55 = vadd.f32 %v582_v56, %v966_v20  ;;  %v611_v54 = vadd.f32 %v583_v40, %v515_v60  ;;  %v177_v58 = vadd.f32 %v145_v41, %v81_v31  ;;  %v241_v49 = vmul.f32 0.40261996, %v209_v46  ;;  %v306_v3 = vld [vmem:[#allocation2 + $0xdb] sm:$0xf]  ;;  %v307_v29 = vld [vmem:[#allocation2 + $0xe3] sm:$0xff] }
  0x79   :  { %v517_v9 = vmul.f32 0.24420135, %v995_v15  ;;  %v1005_v0 = vadd.f32 %v432_v22, %v368_v51  ;;  %v612_v1 = vadd.f32 %v584_v10, %v516_v16  ;;  %v337_v2 = vmul.f32 0.24420135, %v305_v50  ;;  %v402_v18 = vld [vmem:[#allocation2 + $0xdc] sm:$0xf] }
  0x7a   :  { %v642_v37 = vadd.f32 %v610_v55, %v494_v47  ;;  %v643_v43 = vadd.f32 %v619_v32, %v611_v54  ;;  %v273_v5 = vadd.f32 %v241_v49, %v177_v58  ;;  %v433_v57 = vmul.f32 0.054488685, %v401_v24  ;;  %v403_v33 = vld [vmem:[#allocation2 + $0xe4] sm:$0xff]  ;;  %v53_v48 = vld [vmem:[#allocation2 + $0xf0] sm:$0xff]  ;;  %v404_v32 = vld [vmem:[#allocation2 + $0xec] sm:$0xf] }
  0x7b   :  { %v1008_v20 = vadd.f32 %v516_v16, %v976_v62  ;;  %v518_v60 = vmul.f32 0.24420135, %v1005_v0  ;;  %v620_v30 = vmul.f32 0.054488685, %v1005_v0  ;;  %v561_v21 = vmul.f32 0.40261996, %v973_v45 }
  0x7c   :  { %666 = vst [vmem:[#allocation5 + $0x78] sm:$0xf] %v642_v37  ;;  %667 = vst [vmem:[#allocation5 + $0x80] sm:$0xff] %v643_v43  ;;  %v369_v38 = vadd.f32 %v337_v2, %v273_v5  ;;  %v82_v25 = vmul.f32 0.054488685, %v50_v53  ;;  %v1013_v63 = vadd.f32 %v517_v9, %v493_v61  ;;  %v117_v58 = vld [vmem:[#allocation2 + $0xf1] sm:$0xff] }
  0x7d   :  { %v146_v34 = vmul.f32 0.24420135, %v114_v6  ;;  %v242_v7 = vmul.f32 0.40261996, %v210_v52  ;;  %v1015_v27 = vadd.f32 %v518_v60, %v494_v47  ;;  %v644_v8 = vadd.f32 %v620_v30, %v612_v1  ;;  %v52_v16 = vld [vmem:[#allocation2 + $0xe8] sm:$0xf] }
  0x7e   :  { %v585_v62 = vadd.f32 %v561_v21, %v971_v26  ;;  %v465_v59 = vadd.f32 %v433_v57, %v369_v38  ;;  %v338_v45 = vmul.f32 0.24420135, %v306_v3  ;;  %v562_v17 = vmul.f32 0.40261996, %v983_v19  ;;  %v116_v36 = vld [vmem:[#allocation2 + $0xe9] sm:$0xf] }
  0x7f   :  { %v178_v35 = vadd.f32 %v146_v34, %v82_v25  ;;  %v212_v23 = vld [vmem:[#allocation2 + $0xea] sm:$0xf]  ;;  %668 = vst [vmem:[#allocation5 + $0x88] sm:$0xf] %v644_v8  ;;  %v83_v39 = vmul.f32 0.054488685, %v51_v11 }
  0x80   :  { %v613_v22 = vadd.f32 %v585_v62, %v517_v9  ;;  %v147_v61 = vmul.f32 0.24420135, %v115_v12  ;;  %v243_v42 = vmul.f32 0.40261996, %v211_v14  ;;  %v621_v13 = vmul.f32 0.054488685, %v465_v59 }
  0x81   :  { %v274_v44 = vadd.f32 %v242_v7, %v178_v35  ;;  %v434_v31 = vmul.f32 0.054488685, %v402_v18  ;;  %v586_v26 = vadd.f32 %v562_v17, %v980_v4  ;;  %v308_v46 = vld [vmem:[#allocation2 + $0xeb] sm:$0xf]  ;;  %v339_v40 = vmul.f32 0.24420135, %v307_v29 }
  0x82   :  { %v179_v56 = vadd.f32 %v147_v61, %v83_v39  ;;  %v435_v41 = vmul.f32 0.054488685, %v403_v33  ;;  %v563_v50 = vmul.f32 0.40261996, %v995_v15  ;;  %v645_v19 = vadd.f32 %v621_v13, %v613_v22  ;;  %v213_v49 = vld [vmem:[#allocation2 + $0xf2] sm:$0xff] }
  0x83   :  { %v370_v24 = vadd.f32 %v338_v45, %v274_v44  ;;  %v591_v51 = vmul.f32 0.24420135, %v465_v59  ;;  %v84_v47 = vmul.f32 0.054488685, %v52_v16  ;;  %v148_v55 = vmul.f32 0.24420135, %v116_v36 }
  0x84   :  { %v275_v10 = vadd.f32 %v243_v42, %v179_v56  ;;  %v587_v53 = vadd.f32 %v563_v50, %v987_v28  ;;  %v244_v54 = vmul.f32 0.40261996, %v212_v23  ;;  %669 = vst [vmem:[#allocation5 + $0x90] sm:$0xff] %v645_v19  ;;  %v614_v6 = vadd.f32 %v586_v26, %v518_v60  ;;  %v309_v1 = vld [vmem:[#allocation2 + $0xf3] sm:$0xff]  ;;  %v310_v25 = vld [vmem:[#allocation2 + $0xfb] sm:$0xf] }
  0x85   :  { %v466_v4 = vadd.f32 %v434_v31, %v370_v24  ;;  %v340_v52 = vmul.f32 0.24420135, %v308_v46  ;;  %v564_v9 = vmul.f32 0.40261996, %v1005_v0  ;;  %v405_v15 = vld [vmem:[#allocation2 + $0xf4] sm:$0xff]  ;;  %v180_v3 = vadd.f32 %v148_v55, %v84_v47 }
  0x86   :  { %v371_v2 = vadd.f32 %v339_v40, %v275_v10  ;;  %v436_v37 = vmul.f32 0.054488685, %v404_v32  ;;  %v85_v43 = vmul.f32 0.054488685, %v53_v48  ;;  %v54_v5 = vld [vmem:[#allocation2 + $0xf8] sm:$0xf]  ;;  %v615_v28 = vadd.f32 %v591_v51, %v587_v53 }
  0x87   :  { %v118_v57 = vld [vmem:[#allocation2 + $0xf9] sm:$0xf]  ;;  %v622_v11 = vmul.f32 0.054488685, %v466_v4  ;;  %v588_v12 = vadd.f32 %v564_v9, %v1008_v20  ;;  %v149_v14 = vmul.f32 0.24420135, %v117_v58  ;;  %v276_v18 = vadd.f32 %v244_v54, %v180_v3 }
  0x88   :  { %v214_v30 = vld [vmem:[#allocation2 + $0xfa] sm:$0xf]  ;;  %v467_v21 = vadd.f32 %v435_v41, %v371_v2  ;;  %v592_v60 = vmul.f32 0.24420135, %v466_v4  ;;  %v245_v38 = vmul.f32 0.40261996, %v213_v49 }
  0x89   :  { %v646_v0 = vadd.f32 %v622_v11, %v614_v6  ;;  %v181_v34 = vadd.f32 %v149_v14, %v85_v43  ;;  %v341_v7 = vmul.f32 0.24420135, %v309_v1  ;;  %v437_v8 = vmul.f32 0.054488685, %v405_v15  ;;  %v406_v62 = vld [vmem:[#allocation2 + $0xfc] sm:$0xf] }
  0x8a   :  { %v623_v29 = vmul.f32 0.054488685, %v467_v21  ;;  %v372_v33 = vadd.f32 %v340_v52, %v276_v18  ;;  %v565_v16 = vmul.f32 0.40261996, %v465_v59  ;;  %v593_v35 = vmul.f32 0.24420135, %v467_v21 }
  0x8b   :  { %670 = vst [vmem:[#allocation5 + $0x98] sm:$0xf] %v646_v0  ;;  %v277_v45 = vadd.f32 %v245_v38, %v181_v34  ;;  %v86_v17 = vmul.f32 0.054488685, %v54_v5  ;;  %v150_v20 = vmul.f32 0.24420135, %v118_v57  ;;  %v616_v39 = vadd.f32 %v592_v60, %v588_v12 }
  0x8c   :  { %v246_v36 = vmul.f32 0.40261996, %v214_v30  ;;  %v647_v23 = vadd.f32 %v623_v29, %v615_v28  ;;  %v468_v22 = vadd.f32 %v436_v37, %v372_v33  ;;  %v589_v61 = vadd.f32 %v565_v16, %v1013_v63 }
  0x8d   :  { %v373_v42 = vadd.f32 %v341_v7, %v277_v45  ;;  %v182_v13 = vadd.f32 %v150_v20, %v86_v17  ;;  %v342_v44 = vmul.f32 0.24420135, %v310_v25  ;;  %v566_v31 = vmul.f32 0.40261996, %v466_v4 }
  0x8e   :  { %671 = vst [vmem:[#allocation5 + $0xa0] sm:$0xff] %v647_v23  ;;  %v624_v26 = vmul.f32 0.054488685, %v468_v22  ;;  %v617_v46 = vadd.f32 %v593_v35, %v589_v61  ;;  %v438_v48 = vmul.f32 0.054488685, %v406_v62 }
  0x8f   :  { %v469_v59 = vadd.f32 %v437_v8, %v373_v42  ;;  %v278_v56 = vadd.f32 %v246_v36, %v182_v13  ;;  %v590_v40 = vadd.f32 %v566_v31, %v1015_v27  ;;  %v594_v41 = vmul.f32 0.24420135, %v468_v22 }
  0x90   :  { %v648_v50 = vadd.f32 %v624_v26, %v616_v39 }
  0x91   :  { %v625_v19 = vmul.f32 0.054488685, %v469_v59  ;;  %v374_v24 = vadd.f32 %v342_v44, %v278_v56  ;;  %v618_v63 = vadd.f32 %v594_v41, %v590_v40 }
  0x92   :  { %672 = vst [vmem:[#allocation5 + $0xa8] sm:$0xf] %v648_v50 }
  0x93   :  { %v649_v51 = vadd.f32 %v625_v19, %v617_v46  ;;  %v470_v47 = vadd.f32 %v438_v48, %v374_v24 }
  0x95   :  { %673 = vst [vmem:[#allocation5 + $0xb0] sm:$0xff] %v649_v51  ;;  %v626_v32 = vmul.f32 0.054488685, %v470_v47 }
  0x97   :  { %v650_v10 = vadd.f32 %v626_v32, %v618_v63 }
  0x99   :  { %674 = vst [vmem:[#allocation5 + $0xb8] sm:$0xf] %v650_v10 }
  0x9a   :  { %727 = shalt.err (!%p724_p9)
}
  0x9b   :  { %686 = dma.vmem_to_hbm [thread:$0]  %s681_s13, 3072, %s1033_s1, [#allocation4], %s741_s9, %s741_s9, %s742_s10  }
  0x9c   :  { %738 = dma.done.wait [#allocation4], 3072  }
  0x9d   :  { %739 = vsyncadd [#allocation4], 4294964224 }
  0x9e   :  { %690 = vsyncpa [#allocation3], 1 }
  0x9f   :  { %691 = vsyncpa [#allocation4], 1 }

</bundles_post_ra>
